<compile_context>
chip_gen: v7x
topology: tpu7x:2x2x1
jax: 0.10.0
libtpu: 0.0.40
codegen_flags: <defaults>
</compile_context>

<pallas_src>
import functools

import jax
import jax.numpy as jnp
from jax import lax
from jax.experimental import pallas as pl
from jax.experimental.pallas import tpu as pltpu

ALPHA = 0.1
# torch.nn.BCELoss clamps each log term at -100 for numerical stability.
_LOG_CLAMP = -100.0
# Target per-array tile size streamed per grid step (~85%+ of HBM roofline for f32).
_TARGET_TILE_BYTES = 2 * 1024 * 1024


def _as_2d(x):
    """Free (metadata-only) reshape of a contiguous array to (rows, cols)."""
    if x.ndim == 0:
        return x.reshape(1, 1)
    if x.ndim == 1:
        return x.reshape(1, x.shape[0])
    return x.reshape(-1, x.shape[-1])


def _adv_loss_kernel(vad_ref, mask_ref, noise_ref, bce_ref, abs_ref, *,
                     rows, block_rows, need_row_mask):
    i = pl.program_id(0)

    # Zero the resident accumulators at the first reduction step.
    @pl.when(i == 0)
    def _init():
        bce_ref[...] = jnp.zeros_like(bce_ref)
        abs_ref[...] = jnp.zeros_like(abs_ref)

    vad = vad_ref[...].astype(jnp.float32)
    mask = mask_ref[...].astype(jnp.float32)
    noise = noise_ref[...].astype(jnp.float32)

    # Two-log form kept on purpose: exact for soft (non-binary) targets, like torch
    # BCELoss.  Clamp BEFORE the multiply so 0 * clamp(log(0)) == 0 exactly.
    log_p = jnp.maximum(jnp.log(vad), _LOG_CLAMP)
    log_1mp = jnp.maximum(jnp.log(1.0 - vad), _LOG_CLAMP)
    bce_terms = mask * log_p + (1.0 - mask) * log_1mp
    abs_terms = jnp.abs(noise)

    if need_row_mask:
        # Ragged row tail of the last grid step: rows beyond the logical array contain
        # unspecified data; zero their contribution (jnp.where does not propagate NaN
        # from the unselected branch).
        row_ids = i * block_rows + lax.broadcasted_iota(jnp.int32, bce_terms.shape, 0)
        valid = row_ids < rows
        bce_terms = jnp.where(valid, bce_terms, 0.0)
        abs_terms = jnp.where(valid, abs_terms, 0.0)

    # Sublane reduce (block_rows, cols) -> (1, cols); cross-lane reduce and the single /N
    # are deferred to the tiny wrapper-side combine.
    bce_ref[...] += jnp.sum(bce_terms, axis=0, keepdims=True)
    abs_ref[...] += jnp.sum(abs_terms, axis=0, keepdims=True)


def adversarial_loss(vad_output, noise, mask, alpha=ALPHA):
    assert vad_output.shape == mask.shape, "BCE requires vad_output and mask to match"
    # TODO(synk): if the real model ever passes noise with a different element count,
    # run the |noise| reduction as a separate pass instead of sharing the tiling.
    assert noise.size == vad_output.size, (
        "fused streaming reduction requires noise to have the same element count")

    vad2 = _as_2d(vad_output)
    rows, cols = vad2.shape
    mask2 = mask.reshape(rows, cols)
    noise2 = noise.reshape(rows, cols)

    itemsize = jnp.dtype(vad2.dtype).itemsize
    # Sublane granule for the native packed tile of this dtype (f32: 8, bf16: 16, i8: 32).
    sublane = 8 * max(1, 4 // itemsize)
    rows_fit = max(sublane,
                   (_TARGET_TILE_BYTES // max(1, cols * itemsize)) // sublane * sublane)
    # TODO(synk): tile the trailing dim too if a single `sublane`-row slab ever exceeds
    # the VMEM budget (extremely long last dimension).

    if rows <= rows_fit:
        block_rows = rows          # single tile; block == full dim (no divisibility rule)
        num_tiles = 1
    else:
        block_rows = rows_fit      # multiple of the sublane granule
        num_tiles = pl.cdiv(rows, block_rows)
    need_row_mask = (block_rows * num_tiles) != rows

    in_spec = pl.BlockSpec((block_rows, cols), lambda i: (i, 0))
    out_spec = pl.BlockSpec((1, cols), lambda i: (0, 0))

    cost = pl.CostEstimate(
        flops=9 * rows * cols,
        transcendentals=2 * rows * cols,
        bytes_accessed=3 * rows * cols * itemsize + 2 * cols * 4,
    )

    kernel = functools.partial(
        _adv_loss_kernel,
        rows=rows,
        block_rows=block_rows,
        need_row_mask=need_row_mask,
    )

    bce_sum, abs_sum = pl.pallas_call(
        kernel,
        out_shape=(
            jax.ShapeDtypeStruct((1, cols), jnp.float32),
            jax.ShapeDtypeStruct((1, cols), jnp.float32),
        ),
        grid=(num_tiles,),
        in_specs=[in_spec, in_spec, in_spec],
        out_specs=(out_spec, out_spec),
        compiler_params=pltpu.CompilerParams(
            dimension_semantics=("arbitrary",),
            vmem_limit_bytes=32 * 1024 * 1024,
        ),
        cost_estimate=cost,
    )(vad2, mask2, noise2)

    # Tiny final combine: cross-lane sums + the two separate means.
    adv_loss = jnp.sum(bce_sum) / jnp.float32(vad_output.size)     # == -BCELoss(mean)
    noise_loss = jnp.sum(abs_sum) / jnp.float32(noise.size)
    return adv_loss + jnp.float32(alpha) * noise_loss


def _reference(vad_output, noise, mask, alpha=ALPHA):
    log_p = jnp.maximum(jnp.log(vad_output), _LOG_CLAMP)
    log_1mp = jnp.maximum(jnp.log(1.0 - vad_output), _LOG_CLAMP)
    adv = jnp.mean(mask * log_p + (1.0 - mask) * log_1mp)
    return adv + alpha * jnp.mean(jnp.abs(noise))


if __name__ == "__main__":
    key = jax.random.PRNGKey(0)
    k1, k2, k3 = jax.random.split(key, 3)

    # Small shapes; T deliberately not a multiple of 128 to exercise the lane-tail path.
    B, T = 8, 200
    vad_output = jax.random.uniform(k1, (B, T), jnp.float32, 1e-4, 1.0 - 1e-4)
    mask = (jax.random.uniform(k2, (B, T), jnp.float32) > 0.5).astype(jnp.float32)
    noise = jax.random.normal(k3, (B, T), jnp.float32)

    loss = adversarial_loss(vad_output, noise, mask)
    jax.block_until_ready(loss)
    ref = _reference(vad_output, noise, mask)
    assert jnp.allclose(loss, ref, rtol=1e-5, atol=1e-5), (loss, ref)

    # 1-D variant (exercises the free reshape-to-2D path).
    N1 = 373
    vad1 = jax.random.uniform(k1, (N1,), jnp.float32, 1e-4, 1.0 - 1e-4)
    mask1 = (jax.random.uniform(k2, (N1,), jnp.float32) > 0.5).astype(jnp.float32)
    noise1 = jax.random.normal(k3, (N1,), jnp.float32)

    loss1 = adversarial_loss(vad1, noise1, mask1)
    jax.block_until_ready(loss1)
    ref1 = _reference(vad1, noise1, mask1)
    assert jnp.allclose(loss1, ref1, rtol=1e-5, atol=1e-5), (loss1, ref1)

    print("KERNEL_OK")
</pallas_src>

<mosaic_0001>
module attributes {stable_mosaic.version = 11 : i64} {
  func.func @_adv_loss_kernel(%arg0: i32, %arg1: memref<8x200xf32, #tpu.memory_space<vmem>>, %arg2: memref<8x200xf32, #tpu.memory_space<vmem>>, %arg3: memref<8x200xf32, #tpu.memory_space<vmem>>, %arg4: memref<1x200xf32, #tpu.memory_space<vmem>>, %arg5: memref<1x200xf32, #tpu.memory_space<vmem>>) attributes {dimension_semantics = [#tpu.dimension_semantics<arbitrary>], iteration_bounds = array<i64: 1>, scalar_prefetch = 0 : i64, scratch_operands = 0 : i64, tpu.core_type = #tpu.core_type<tc>, window_params = [{transform_indices = @transform_0, window_bounds = array<i64: 8, 200>}, {transform_indices = @transform_1, window_bounds = array<i64: 8, 200>}, {transform_indices = @transform_2, window_bounds = array<i64: 8, 200>}, {pipeline_mode = #tpu.pipeline_mode<synchronous>, transform_indices = @transform_3, window_bounds = array<i64: 1, 200>}, {pipeline_mode = #tpu.pipeline_mode<synchronous>, transform_indices = @transform_4, window_bounds = array<i64: 1, 200>}]} {
    %c0_i32 = arith.constant 0 : i32
    %0 = arith.cmpi eq, %arg0, %c0_i32 : i32
    %1 = arith.extui %0 : i1 to i32
    %c0_i32_0 = arith.constant 0 : i32
    %2 = arith.cmpi ne, %1, %c0_i32_0 : i32
    scf.if %2 {
      %cst_19 = arith.constant 0.000000e+00 : f32
      %30 = vector.broadcast %cst_19 : f32 to vector<1x200xf32>
      %c0_20 = arith.constant 0 : index
      %c0_21 = arith.constant 0 : index
      %31 = vector.load %arg4[%c0_20, %c0_21] : memref<1x200xf32, #tpu.memory_space<vmem>>, vector<1x200xf32>
      tpu.vector_store %arg4[%c0_20, %c0_21], %30 {strides = array<i32>} : memref<1x200xf32, #tpu.memory_space<vmem>>, vector<1x200xf32>,
      %cst_22 = arith.constant 0.000000e+00 : f32
      %32 = vector.broadcast %cst_22 : f32 to vector<1x200xf32>
      %c0_23 = arith.constant 0 : index
      %c0_24 = arith.constant 0 : index
      %33 = vector.load %arg5[%c0_23, %c0_24] : memref<1x200xf32, #tpu.memory_space<vmem>>, vector<1x200xf32>
      tpu.vector_store %arg5[%c0_23, %c0_24], %32 {strides = array<i32>} : memref<1x200xf32, #tpu.memory_space<vmem>>, vector<1x200xf32>,
    } else {
    }
    %c0 = arith.constant 0 : index
    %c0_1 = arith.constant 0 : index
    %3 = vector.load %arg1[%c0, %c0_1] : memref<8x200xf32, #tpu.memory_space<vmem>>, vector<8x200xf32>
    %c0_2 = arith.constant 0 : index
    %c0_3 = arith.constant 0 : index
    %4 = vector.load %arg2[%c0_2, %c0_3] : memref<8x200xf32, #tpu.memory_space<vmem>>, vector<8x200xf32>
    %c0_4 = arith.constant 0 : index
    %c0_5 = arith.constant 0 : index
    %5 = vector.load %arg3[%c0_4, %c0_5] : memref<8x200xf32, #tpu.memory_space<vmem>>, vector<8x200xf32>
    %6 = math.log %3 : vector<8x200xf32>
    %cst = arith.constant -1.000000e+02 : f32
    %7 = vector.broadcast %cst : f32 to vector<8x200xf32>
    %8 = arith.maximumf %6, %7 : vector<8x200xf32>
    %cst_6 = arith.constant 1.000000e+00 : f32
    %9 = vector.broadcast %cst_6 : f32 to vector<8x200xf32>
    %10 = arith.subf %9, %3 : vector<8x200xf32>
    %11 = math.log %10 : vector<8x200xf32>
    %cst_7 = arith.constant -1.000000e+02 : f32
    %12 = vector.broadcast %cst_7 : f32 to vector<8x200xf32>
    %13 = arith.maximumf %11, %12 : vector<8x200xf32>
    %14 = arith.mulf %4, %8 : vector<8x200xf32>
    %cst_8 = arith.constant 1.000000e+00 : f32
    %15 = vector.broadcast %cst_8 : f32 to vector<8x200xf32>
    %16 = arith.subf %15, %4 : vector<8x200xf32>
    %17 = arith.mulf %16, %13 : vector<8x200xf32>
    %18 = arith.addf %14, %17 : vector<8x200xf32>
    %19 = math.absf %5 : vector<8x200xf32>
    %c0_9 = arith.constant 0 : index
    %c0_10 = arith.constant 0 : index
    %20 = vector.load %arg4[%c0_9, %c0_10] : memref<1x200xf32, #tpu.memory_space<vmem>>, vector<1x200xf32>
    %cst_11 = arith.constant dense<0.000000e+00> : vector<200xf32>
    %21 = vector.multi_reduction <add>, %18, %cst_11 [0] : vector<8x200xf32> to vector<200xf32>
    %22 = vector.shape_cast %21 : vector<200xf32> to vector<1x200xf32>
    %23 = arith.addf %20, %22 : vector<1x200xf32>
    %c0_12 = arith.constant 0 : index
    %c0_13 = arith.constant 0 : index
    %24 = vector.load %arg4[%c0_12, %c0_13] : memref<1x200xf32, #tpu.memory_space<vmem>>, vector<1x200xf32>
    tpu.vector_store %arg4[%c0_12, %c0_13], %23 {strides = array<i32>} : memref<1x200xf32, #tpu.memory_space<vmem>>, vector<1x200xf32>,
    %c0_14 = arith.constant 0 : index
    %c0_15 = arith.constant 0 : index
    %25 = vector.load %arg5[%c0_14, %c0_15] : memref<1x200xf32, #tpu.memory_space<vmem>>, vector<1x200xf32>
    %cst_16 = arith.constant dense<0.000000e+00> : vector<200xf32>
    %26 = vector.multi_reduction <add>, %19, %cst_16 [0] : vector<8x200xf32> to vector<200xf32>
    %27 = vector.shape_cast %26 : vector<200xf32> to vector<1x200xf32>
    %28 = arith.addf %25, %27 : vector<1x200xf32>
    %c0_17 = arith.constant 0 : index
    %c0_18 = arith.constant 0 : index
    %29 = vector.load %arg5[%c0_17, %c0_18] : memref<1x200xf32, #tpu.memory_space<vmem>>, vector<1x200xf32>
    tpu.vector_store %arg5[%c0_17, %c0_18], %28 {strides = array<i32>} : memref<1x200xf32, #tpu.memory_space<vmem>>, vector<1x200xf32>,
    return
  }
  func.func @transform_0(%arg0: i32) -> (i32, i32) {
    %c0_i32 = arith.constant 0 : i32
    %c0_i32_0 = arith.constant 0 : i32
    return %arg0, %c0_i32 : i32, i32
  }
  func.func @transform_1(%arg0: i32) -> (i32, i32) {
    %c0_i32 = arith.constant 0 : i32
    %c0_i32_0 = arith.constant 0 : i32
    return %arg0, %c0_i32 : i32, i32
  }
  func.func @transform_2(%arg0: i32) -> (i32, i32) {
    %c0_i32 = arith.constant 0 : i32
    %c0_i32_0 = arith.constant 0 : i32
    return %arg0, %c0_i32 : i32, i32
  }
  func.func @transform_3(%arg0: i32) -> (i32, i32) {
    %c0_i32 = arith.constant 0 : i32
    %c0_i32_0 = arith.constant 0 : i32
    %c0_i32_1 = arith.constant 0 : i32
    return %c0_i32, %c0_i32_0 : i32, i32
  }
  func.func @transform_4(%arg0: i32) -> (i32, i32) {
    %c0_i32 = arith.constant 0 : i32
    %c0_i32_0 = arith.constant 0 : i32
    %c0_i32_1 = arith.constant 0 : i32
    return %c0_i32, %c0_i32_0 : i32, i32
  }
}

</mosaic_0001>

<bundles_post_ra>
// kernel: tpu_custom_call.1
= control target key start
LH: loop header
LB: loop body
LE: loop exit
PB: predicated region body
PF: predicated region fallthrough
CT: control target
= control target key end

     0   :  { %10 = vsyncpa [#allocation3], 0  ;;  %s435_s0 = inlined_call_operand.hbm [shape: f32[8,200], index: 0, kind: input, shape index: {}]   ;;  %s436_s1 = inlined_call_operand.hbm [shape: f32[8,200], index: 1, kind: input, shape index: {}]   ;;  %s437_s2 = inlined_call_operand.hbm [shape: f32[8,200], index: 2, kind: input, shape index: {}]   ;;  %s438_s3 = inlined_call_operand.hbm [shape: f32[1,200], index: 3, kind: output, shape index: {0}]   ;;  %s439_s4 = inlined_call_operand.hbm [shape: f32[1,200], index: 4, kind: output, shape index: {1}]  }
   0x1   :  { %11 = vsyncpa [#allocation6], 0 }
   0x2   :  { %12 = vsyncpa [#allocation4], 0 }
   0x3   :  { %13 = vsyncpa [#allocation10], 0  ;;  %s329_s15 = smov [#allocation5]   ;;  %s330_s17 = smov [#allocation2]  }
   0x4   :  { %s30_s16 = sshll.u32 %s329_s15, 4  ;;  %s20_s18 = sshll.u32 %s330_s17, 4  ;;  %s31_s16 = int_to_ptr.vmem [resolvable:$true] %s30_s16  ;;  %s21_s18 = int_to_ptr.vmem [resolvable:$true] %s20_s18 }
   0x5   :  { %s211_s21 = scalar_lea.hbm %s436_s1, 256 }
   0x6   :  { %p212_p0 = scmp.ne.s32.totalorder %s436_s1, %s211_s21  ;;  %p215_p1 = scmp.lt.u32.totalorder %s211_s21, %s436_s1 }
   0x8   :  { %p217_p2 = pnand %p215_p1, %p212_p0 }
   0xa   :  { %220 = shalt.err (!%p217_p2)
}
   0xb   :  { %s221_s26 = scalar_lea.vmem %s31_s16, 256  ;;  %p226_p4 = scmp.lt.s32.totalorder %s31_s16, %s31_s16 }
   0xc   :  { %p222_p3 = scmp.ne.s32.totalorder %s31_s16, %s221_s26  ;;  %p227_p5 = scmp.lt.s32.totalorder %s221_s26, %s221_s26 }
   0xe   :  { %p228_p6 = por %p227_p5, %p226_p4 }
  0x10   :  { %p229_p7 = pnand %p228_p6, %p222_p3 }
  0x12   :  { %232 = shalt.err (!%p229_p7)
}
  0x13   :  { %33 = dma.hbm_to_vmem [thread:$0]  %s436_s1, 256, %s31_s16, [#allocation6]  }
  0x14   :  { %s233_s5 = scalar_lea.hbm %s435_s0, 256 }
  0x15   :  { %p234_p8 = scmp.ne.s32.totalorder %s435_s0, %s233_s5  ;;  %p237_p9 = scmp.lt.u32.totalorder %s233_s5, %s435_s0 }
  0x17   :  { %p239_p10 = pnand %p237_p9, %p234_p8 }
  0x19   :  { %242 = shalt.err (!%p239_p10)
}
  0x1a   :  { %s243_s10 = scalar_lea.vmem %s21_s18, 256  ;;  %p248_p12 = scmp.lt.s32.totalorder %s21_s18, %s21_s18 }
  0x1b   :  { %p244_p11 = scmp.ne.s32.totalorder %s21_s18, %s243_s10  ;;  %p249_p13 = scmp.lt.s32.totalorder %s243_s10, %s243_s10 }
  0x1d   :  { %p250_p0 = por %p249_p13, %p248_p12 }
  0x1f   :  { %p251_p1 = pnand %p250_p0, %p244_p11 }
  0x21   :  { %254 = shalt.err (!%p251_p1)
}
  0x22   :  { %23 = dma.hbm_to_vmem [thread:$0]  %s435_s0, 256, %s21_s18, [#allocation3]  }
  0x23   :  { %s331_s12 = smov [#allocation7]   ;;  %s255_s16 = scalar_lea.hbm %s437_s2, 256 }
  0x24   :  { %s40_s13 = sshll.u32 %s331_s12, 4  ;;  %p256_p2 = scmp.ne.s32.totalorder %s437_s2, %s255_s16  ;;  %s41_s13 = int_to_ptr.vmem [resolvable:$true] %s40_s13 }
  0x25   :  { %p259_p3 = scmp.lt.u32.totalorder %s255_s16, %s437_s2 }
  0x27   :  { %p261_p4 = pnand %p259_p3, %p256_p2 }
  0x29   :  { %264 = shalt.err (!%p261_p4)
}
  0x2a   :  { %s265_s22 = scalar_lea.vmem %s41_s13, 256  ;;  %p270_p6 = scmp.lt.s32.totalorder %s41_s13, %s41_s13 }
  0x2b   :  { %p266_p5 = scmp.ne.s32.totalorder %s41_s13, %s265_s22  ;;  %p271_p7 = scmp.lt.s32.totalorder %s265_s22, %s265_s22 }
  0x2d   :  { %p272_p8 = por %p271_p7, %p270_p6 }
  0x2f   :  { %p273_p9 = pnand %p272_p8, %p266_p5 }
  0x31   :  { %276 = shalt.err (!%p273_p9)
}
  0x32   :  { %43 = dma.hbm_to_vmem [thread:$0]  %s437_s2, 256, %s41_s13, [#allocation6]  }
  0x33   :  { %321 = dma.done.wait [#allocation3], 256  }
  0x34   :  { %322 = vsyncadd [#allocation3], 4294967040 }
  0x35   :  { %323 = dma.done.wait [#allocation6], 512  }
  0x36   :  { %324 = vsyncadd [#allocation6], 4294966784  ;;  %v57_v0 = vlaneseq  ;;  %v332_v2 = vmov 0.0   ;;  %v63_v3 = vld [vmem:[#allocation2] sm:$0xff]  ;;  %v64_v4 = vld [vmem:[#allocation2 + $0x8] sm:$0xff]  ;;  %vm100_vm1 = vcmask 588800  }
  0x37   :  { %203 = vlog2.f32 %v63_v3  ;;  %v75_v5 = vsub.f32 1.0, %v63_v3  ;;  %v76_v6 = vsub.f32 1.0, %v64_v4  ;;  %v67_v7 = vld [vmem:[#allocation7] sm:$0xff]  ;;  %v68_v8 = vld [vmem:[#allocation7 + $0x8] sm:$0xff]  ;;  %v333_v13 = vmov 1966171168  }
  0x38   :  { %vm397_vm0 = vcmp.lt.s32.totalorder %v57_v0, 200  ;;  %205 = vlog2.f32 %v64_v4  ;;  %v91_v9 = vand.u32 2147483647, %v67_v7  ;;  %v92_v10 = vand.u32 2147483647, %v68_v8  ;;  %v65_v24 = vld [vmem:[#allocation5] sm:$0xff] }
  0x39   :  { %61 = vst.msk [vmem:[#allocation8] sm:$0x3] %vm397_vm0, %v332_v2  ;;  %62 = vst.msk [vmem:[#allocation9] sm:$0x3] %vm397_vm0, %v332_v2  ;;  %207 = vlog2.f32 %v75_v5  ;;  %v112_v14 = vunpack.c.l.s4 %v333_v13  ;;  %v115_v20 = vshrl.u32 %v57_v0, 7  ;;  %v66_v27 = vld [vmem:[#allocation5 + $0x8] sm:$0xff] }
  0x3a   :  { %209 = vlog2.f32 %v76_v6  ;;  %v133_v11 = vrot.slane %v91_v9, 4  ;;  %v139_v12 = vsel %vm100_vm1, %v92_v10, 0.0  ;;  %v85_v37 = vsub.f32 1.0, %v65_v24  ;;  %s334_s2 = smov [#allocation9]  }
  0x3b   :  { %v140_v15 = vrot.slane %v139_v12, 4  ;;  %v113_v19 = vunpack.c.0.s8 %v112_v14  ;;  %v86_v41 = vsub.f32 1.0, %v66_v27  ;;  %s182_s23 = sshll.u32 %s334_s2, 4  ;;  %s183_s23 = int_to_ptr.vmem [resolvable:$true] %s182_s23 }
  0x3c   :  { %v134_v16 = vadd.f32 %v133_v11, %v91_v9  ;;  %s277_s24 = scalar_lea.vmem %s183_s23, 32  ;;  %p282_p11 = scmp.lt.s32.totalorder %s183_s23, %s183_s23 }
  0x3d   :  { %v141_v17 = vadd.f32 %v140_v15, %v139_v12  ;;  %v116_v31 = vsub.s32 %v113_v19, %v115_v20  ;;  %p278_p10 = scmp.ne.s32.totalorder %s183_s23, %s277_s24  ;;  %p283_p12 = scmp.lt.s32.totalorder %s277_s24, %s277_s24 }
  0x3e   :  { %v135_v18 = vrot.slane %v134_v16, 2 }
  0x3f   :  { %v142_v21 = vrot.slane %v141_v17, 2  ;;  %p284_p13 = por %p283_p12, %p282_p11 }
  0x40   :  { %v136_v22 = vadd.f32 %v135_v18, %v134_v16  ;;  %v132_v52 = vld [vmem:[#allocation9] sm:$0x3] }
  0x41   :  { %v204_v23 = vpop.eup %203  ;;  %v143_v25 = vadd.f32 %v142_v21, %v141_v17  ;;  %p285_p0 = pnand %p284_p13, %p278_p10 }
  0x42   :  { %v206_v26 = vpop.eup %205  ;;  %v70_v28 = vmul.f32 0.6931472, %v204_v23  ;;  %v137_v29 = vrot.slane %v136_v22, 1 }
  0x43   :  { %v208_v30 = vpop.eup %207  ;;  %v72_v32 = vmul.f32 0.6931472, %v206_v26  ;;  %v144_v33 = vrot.slane %v143_v25, 1 }
  0x44   :  { %v210_v34 = vpop.eup %209  ;;  %v73_v35 = vmax.f32 %v70_v28, -100.0  ;;  %v78_v36 = vmul.f32 0.6931472, %v208_v30  ;;  %v138_v38 = vadd.f32 %v137_v29, %v136_v22 }
  0x45   :  { %v74_v39 = vmax.f32 %v72_v32, -100.0  ;;  %v80_v40 = vmul.f32 0.6931472, %v210_v34  ;;  %v145_v42 = vadd.f32 %v144_v33, %v143_v25 }
  0x46   :  { %v81_v43 = vmax.f32 %v78_v36, -100.0  ;;  %v83_v44 = vmul.f32 %v73_v35, %v65_v24 }
  0x47   :  { %v82_v45 = vmax.f32 %v80_v40, -100.0  ;;  %v84_v46 = vmul.f32 %v74_v39, %v66_v27  ;;  %v148_v47 = vcombine.low %v138_v38, %v145_v42 }
  0x48   :  { %v87_v48 = vmul.f32 %v85_v37, %v81_v43 }
  0x49   :  { %v88_v49 = vmul.f32 %v86_v41, %v82_v45  ;;  %v155_v50 = vrot.slane %v148_v47, %v116_v31 }
  0x4a   :  { %v89_v51 = vadd.f32 %v87_v48, %v83_v44 }
  0x4b   :  { %v90_v53 = vadd.f32 %v88_v49, %v84_v46  ;;  %v162_v54 = vrot.slane %v155_v50, %v116_v31 }
  0x4c   :  { %v94_v55 = vrot.slane %v89_v51, 4 }
  0x4d   :  { %v101_v56 = vsel %vm100_vm1, %v90_v53, 0.0  ;;  %v164_v57 = vadd.f32 %v162_v54, %v132_v52 }
  0x4e   :  { %v95_v58 = vadd.f32 %v94_v55, %v89_v51  ;;  %v102_v59 = vrot.slane %v101_v56, 4 }
  0x4f   :  { %165 = vst.msk [vmem:[#allocation9] sm:$0x3] %vm397_vm0, %v164_v57 }
  0x50   :  { %v96_v60 = vrot.slane %v95_v58, 2  ;;  %v103_v61 = vadd.f32 %v102_v59, %v101_v56 }
  0x51   :  { %288 = shalt.err (!%p285_p0)
}
  0x52   :  { %s289_s27 = scalar_lea.hbm %s439_s4, 32 }
  0x53   :  { %p290_p1 = scmp.ne.s32.totalorder %s439_s4, %s289_s27  ;;  %p293_p2 = scmp.lt.u32.totalorder %s289_s27, %s439_s4 }
  0x55   :  { %p295_p3 = pnand %p293_p2, %p290_p1 }
  0x57   :  { %298 = shalt.err (!%p295_p3)
}
  0x58   :  { %185 = dma.vmem_to_hbm [thread:$0]  %s183_s23, 32, %s439_s4, [#allocation10]   ;;  %v97_v62 = vadd.f32 %v96_v60, %v95_v58  ;;  %v104_v63 = vrot.slane %v103_v61, 2  ;;  %v93_v8 = vld [vmem:[#allocation8] sm:$0x3] }
  0x59   :  { %s335_s8 = smov [#allocation8]  }
  0x5a   :  { %v98_v0 = vrot.slane %v97_v62, 1  ;;  %v105_v2 = vadd.f32 %v104_v63, %v103_v61  ;;  %s172_s9 = sshll.u32 %s335_s8, 4  ;;  %s173_s9 = int_to_ptr.vmem [resolvable:$true] %s172_s9 }
  0x5b   :  { %s299_s10 = scalar_lea.vmem %s173_s9, 32  ;;  %p304_p5 = scmp.lt.s32.totalorder %s173_s9, %s173_s9 }
  0x5c   :  { %v99_v3 = vadd.f32 %v98_v0, %v97_v62  ;;  %v106_v4 = vrot.slane %v105_v2, 1  ;;  %p300_p4 = scmp.ne.s32.totalorder %s173_s9, %s299_s10  ;;  %p305_p6 = scmp.lt.s32.totalorder %s299_s10, %s299_s10 }
  0x5e   :  { %v107_v5 = vadd.f32 %v106_v4, %v105_v2  ;;  %p306_p7 = por %p305_p6, %p304_p5 }
  0x60   :  { %v110_v6 = vcombine.low %v99_v3, %v107_v5  ;;  %p307_p8 = pnand %p306_p7, %p300_p4 }
  0x62   :  { %v117_v7 = vrot.slane %v110_v6, %v116_v31 }
  0x64   :  { %v124_v9 = vrot.slane %v117_v7, %v116_v31 }
  0x66   :  { %v126_v10 = vadd.f32 %v124_v9, %v93_v8 }
  0x68   :  { %131 = vst.msk [vmem:[#allocation8] sm:$0x3] %vm397_vm0, %v126_v10 }
  0x69   :  { %310 = shalt.err (!%p307_p8)
}
  0x6a   :  { %s311_s11 = scalar_lea.hbm %s438_s3, 32 }
  0x6b   :  { %p312_p9 = scmp.ne.s32.totalorder %s438_s3, %s311_s11  ;;  %p315_p10 = scmp.lt.u32.totalorder %s311_s11, %s438_s3 }
  0x6d   :  { %p317_p11 = pnand %p315_p10, %p312_p9 }
  0x6f   :  { %320 = shalt.err (!%p317_p11)
}
  0x70   :  { %175 = dma.vmem_to_hbm [thread:$0]  %s173_s9, 32, %s438_s3, [#allocation4]  }
  0x71   :  { %325 = dma.done.wait [#allocation4], 32  }
  0x72   :  { %326 = vsyncadd [#allocation4], 4294967264 }
  0x73   :  { %327 = dma.done.wait [#allocation10], 32  }
  0x74   :  { %328 = vsyncadd [#allocation10], 4294967264 }
  0x75   :  { %192 = vsyncpa [#allocation3], 1 }
  0x76   :  { %193 = vsyncpa [#allocation6], 1 }
  0x77   :  { %194 = vsyncpa [#allocation4], 1 }
  0x78   :  { %195 = vsyncpa [#allocation10], 1 }

</bundles_post_ra>
